<compile_context>
chip_gen: v7x
topology: tpu7x:2x2x1
jax: 0.10.0
libtpu: 0.0.40
codegen_flags: <defaults>
</compile_context>

<pallas_src>
import math

import jax
import jax.numpy as jnp
from jax import lax
from jax.experimental import pallas as pl
from jax.experimental.pallas import tpu as pltpu

EPS = 1e-05

_MAX_TILE_ROWS = 8192  # keep DMA chunky but bounded for tiny D


def _scalenorm_kernel(scale_ref, x_ref, o_ref):
    # scale_ref: SMEM (1,) f32 (scalar prefetch); x_ref/o_ref: VMEM (tile_r, D)
    xf = x_ref[...].astype(jnp.float32)
    # clamp(||x||, eps) == sqrt(max(sum(x^2), eps^2)) because sum(x^2) >= 0,
    # so the whole normalizer fuses into a single EUP rsqrt (no sqrt + divide).
    sq_sum = jnp.sum(xf * xf, axis=-1, keepdims=True)           # (tile_r, 1)
    inv = scale_ref[0] * lax.rsqrt(jnp.maximum(sq_sum, EPS * EPS))
    # Compute in f32 (matches reference numerics); single downcast at the store.
    o_ref[...] = (xf * inv).astype(o_ref.dtype)


def _vmem_capacity_bytes():
    try:
        return int(pltpu.get_tpu_info().vmem_capacity_bytes)
    except Exception:
        # Conservative fallback (v7x-class, 64 MiB/TC) — safe on every gen.
        return 64 * 1024 * 1024


def _pick_tile_rows(n_rows, d, itemsize, tile_budget_bytes):
    """Largest row tile that respects sublane packing, the VMEM tile budget,
    and keeps >= ~4 grid steps so the pipeline / megacore have work to split."""
    # Sublane-packing row alignment: 8 rows for 4-byte, 16 for 2-byte,
    # 32 for 1-byte dtypes.
    row_align = max(8, 32 // max(itemsize, 1))
    rows_aligned = ((n_rows + row_align - 1) // row_align) * row_align

    # 2 pipeline buffers x (in + out) tiles must fit the tile budget.
    tile_r = tile_budget_bytes // (4 * d * itemsize)
    tile_r = min(tile_r, _MAX_TILE_ROWS)
    tile_r = max(row_align, (tile_r // row_align) * row_align)

    # Guarantee >= 4 grid steps (2 per TensorCore on v7x) when rows allow it,
    # so DMA-in / compute / DMA-out overlap instead of serializing.
    min_steps = 4
    if rows_aligned >= min_steps * row_align:
        quarter = (rows_aligned // (min_steps * row_align)) * row_align
        tile_r = min(tile_r, quarter)
    return min(tile_r, rows_aligned)


def scale_norm(x, scale, *, tile_r=None):
    """ScaleNorm over the last axis of x (matches PyTorch ScaleNorm.forward)."""
    orig_shape = x.shape
    d = orig_shape[-1]
    n_rows = 1
    for s in orig_shape[:-1]:
        n_rows *= s
    x2 = x.reshape(n_rows, d)

    itemsize = jnp.dtype(x.dtype).itemsize

    # Generation-aware VMEM budgeting: v7x has only 64 MiB/TC, v5e/v6e 128 MiB.
    vmem_cap = _vmem_capacity_bytes()
    if vmem_cap <= 64 * 1024 * 1024:
        tile_budget = 20 * 1024 * 1024
        vmem_limit = 48 * 1024 * 1024
    else:
        tile_budget = 24 * 1024 * 1024
        vmem_limit = 64 * 1024 * 1024

    if tile_r is None:
        tile_r = _pick_tile_rows(n_rows, d, itemsize, tile_budget)

    # Footprint check for very large D (row tile bottoms out at row_align):
    # raise the limit rather than failing compilation, bounded by capacity.
    # TODO(synk): add a D-split (accumulate-over-D grid axis) fallback for
    # hidden sizes too large for even a single (row_align, D) block in VMEM.
    block_bytes = tile_r * d * itemsize
    est_vmem = 4 * block_bytes + 2 * tile_r * d * 4   # buffers + f32 transients
    vmem_limit = max(vmem_limit, est_vmem + (4 << 20))
    vmem_limit = min(vmem_limit, max(vmem_cap - (8 << 20), 16 << 20))

    # TODO(synk): for very small hidden sizes (D < 128, e.g. D=32) only part of
    # the 128-lane vreg / DMA carries data; a lane-dense (R*D/128, 128) repack
    # with a block-diagonal MXU reduction would recover full-width stores.

    scale_arr = jnp.asarray(scale, dtype=jnp.float32).reshape(1)

    # No padding: the final partial row block is handled by masked boundary
    # DMAs (grid = cdiv). Per-row math keeps any garbage confined to rows
    # that are never written back.
    grid = (pl.cdiv(n_rows, tile_r),)

    out = pl.pallas_call(
        _scalenorm_kernel,
        out_shape=jax.ShapeDtypeStruct((n_rows, d), x.dtype),
        grid_spec=pltpu.PrefetchScalarGridSpec(
            num_scalar_prefetch=1,                      # scale -> SMEM
            grid=grid,
            in_specs=[
                pl.BlockSpec((tile_r, d), lambda i, scale_ref: (i, 0)),
            ],
            out_specs=pl.BlockSpec((tile_r, d), lambda i, scale_ref: (i, 0)),
        ),
        compiler_params=pltpu.CompilerParams(
            # Row axis is embarrassingly parallel -> shard across the two
            # TensorCores on v7x; with >= 4 grid steps the BlockSpec pipeline
            # overlaps DMA with compute on every generation.
            dimension_semantics=("parallel",),
            vmem_limit_bytes=int(vmem_limit),
        ),
    )(scale_arr, x2)

    return out.reshape(orig_shape)


def scale_norm_ref(x, scale, eps=EPS):
    norm = jnp.sqrt(jnp.sum(x.astype(jnp.float32) ** 2, axis=-1, keepdims=True))
    norm = jnp.maximum(norm, eps)
    return (x * (scale / norm)).astype(x.dtype)


if __name__ == "__main__":
    key = jax.random.PRNGKey(0)
    batch, seq, hidden = 2, 8, 32
    x = jax.random.normal(key, (batch, seq, hidden), dtype=jnp.float32)

    # Deterministic parameter init: ScaleNorm is typically constructed with
    # scale = sqrt(hidden).
    scale = float(math.sqrt(hidden))

    out = scale_norm(x, scale)
    jax.block_until_ready(out)

    ref = scale_norm_ref(x, scale)
    assert out.shape == x.shape and out.dtype == x.dtype
    assert jnp.allclose(out, ref, atol=1e-5, rtol=1e-5), "mismatch vs reference"

    # Ragged / multi-tile path: 3*37 = 111 rows -> multiple grid steps with a
    # masked partial final block (exercises the no-pad boundary behavior).
    x_big = jax.random.normal(jax.random.PRNGKey(1), (3, 37, 256), dtype=jnp.float32)
    out_big = scale_norm(x_big, scale)
    jax.block_until_ready(out_big)
    assert jnp.allclose(out_big, scale_norm_ref(x_big, scale), atol=1e-5, rtol=1e-5)

    print("KERNEL_OK")
</pallas_src>

<mosaic_0001>
module attributes {stable_mosaic.version = 11 : i64} {
  func.func @_scalenorm_kernel(%arg0: i32, %arg1: memref<1xf32, #tpu.memory_space<smem>>, %arg2: memref<16x32xf32, #tpu.memory_space<vmem>>, %arg3: memref<16x32xf32, #tpu.memory_space<vmem>>) attributes {dimension_semantics = [#tpu.dimension_semantics<parallel>], iteration_bounds = array<i64: 1>, scalar_prefetch = 1 : i64, scratch_operands = 0 : i64, tpu.core_type = #tpu.core_type<tc>, window_params = [{transform_indices = @transform_0, window_bounds = array<i64: 16, 32>}, {transform_indices = @transform_1, window_bounds = array<i64: 16, 32>}]} {
    %c0 = arith.constant 0 : index
    %c0_0 = arith.constant 0 : index
    %0 = vector.load %arg2[%c0, %c0_0] : memref<16x32xf32, #tpu.memory_space<vmem>>, vector<16x32xf32>
    %1 = arith.mulf %0, %0 : vector<16x32xf32>
    %cst = arith.constant dense<0.000000e+00> : vector<16xf32>
    %2 = vector.multi_reduction <add>, %1, %cst [1] : vector<16x32xf32> to vector<16xf32>
    %3 = vector.shape_cast %2 : vector<16xf32> to vector<16x1xf32>
    %c0_1 = arith.constant 0 : index
    %4 = memref.load %arg1[%c0_1] : memref<1xf32, #tpu.memory_space<smem>>
    %cst_2 = arith.constant 1.000000e-10 : f32
    %5 = vector.broadcast %cst_2 : f32 to vector<16x1xf32>
    %6 = arith.maximumf %3, %5 : vector<16x1xf32>
    %7 = math.rsqrt %6 : vector<16x1xf32>
    %8 = vector.broadcast %4 : f32 to vector<16x1xf32>
    %9 = arith.mulf %8, %7 : vector<16x1xf32>
    %10 = vector.broadcast %9 : vector<16x1xf32> to vector<16x32xf32>
    %11 = arith.mulf %0, %10 : vector<16x32xf32>
    %c0_3 = arith.constant 0 : index
    %c0_4 = arith.constant 0 : index
    %12 = vector.load %arg3[%c0_3, %c0_4] : memref<16x32xf32, #tpu.memory_space<vmem>>, vector<16x32xf32>
    tpu.vector_store %arg3[%c0_3, %c0_4], %11 {strides = array<i32>} : memref<16x32xf32, #tpu.memory_space<vmem>>, vector<16x32xf32>,
    return
  }
  func.func @transform_0(%arg0: i32, %arg1: memref<1xf32, #tpu.memory_space<smem>>) -> (i32, i32) {
    %c0_i32 = arith.constant 0 : i32
    %c0_i32_0 = arith.constant 0 : i32
    return %arg0, %c0_i32 : i32, i32
  }
  func.func @transform_1(%arg0: i32, %arg1: memref<1xf32, #tpu.memory_space<smem>>) -> (i32, i32) {
    %c0_i32 = arith.constant 0 : i32
    %c0_i32_0 = arith.constant 0 : i32
    return %arg0, %c0_i32 : i32, i32
  }
}

</mosaic_0001>

<bundles_post_ra>
// kernel: tpu_custom_call.1
= control target key start
LH: loop header
LB: loop body
LE: loop exit
PB: predicated region body
PF: predicated region fallthrough
CT: control target
= control target key end

     0   :  { %8 = vsyncpa [#allocation5], 0  ;;  %s177_s0 = inlined_call_operand.<no memory space> [shape: f32[1], index: 0, kind: input, shape index: {}]   ;;  %s178_s1 = inlined_call_operand.hbm [shape: f32[16,32], index: 1, kind: input, shape index: {}]   ;;  %s179_s2 = inlined_call_operand.hbm [shape: f32[16,32], index: 2, kind: output, shape index: {}]  }
   0x1   :  { %9 = vsyncpa [#allocation6], 0  ;;  %s121_s9 = smov [#allocation4]   ;;  %s73_s13 = scalar_lea.hbm %s178_s1, 256 }
   0x2   :  { %s15_s10 = sshll.u32 %s121_s9, 4  ;;  %p74_p0 = scmp.ne.s32.totalorder %s178_s1, %s73_s13  ;;  %s16_s10 = int_to_ptr.vmem [resolvable:$true] %s15_s10 }
   0x3   :  { %p77_p1 = scmp.lt.u32.totalorder %s73_s13, %s178_s1 }
   0x5   :  { %p79_p2 = pnand %p77_p1, %p74_p0 }
   0x7   :  { %82 = shalt.err (!%p79_p2)
}
   0x8   :  { %s83_s18 = scalar_lea.vmem %s16_s10, 256  ;;  %p88_p4 = scmp.lt.s32.totalorder %s16_s10, %s16_s10 }
   0x9   :  { %p84_p3 = scmp.ne.s32.totalorder %s16_s10, %s83_s18  ;;  %p89_p5 = scmp.lt.s32.totalorder %s83_s18, %s83_s18 }
   0xb   :  { %p90_p6 = por %p89_p5, %p88_p4 }
   0xd   :  { %p91_p7 = pnand %p90_p6, %p84_p3 }
   0xf   :  { %94 = shalt.err (!%p91_p7)
}
  0x10   :  { %s122_s19 = smov 128   ;;  %s123_s20 = smov 8  }
  0x11   :  { %21 = dma.hbm_to_vmem [thread:$0]  %s178_s1, 256, %s16_s10, [#allocation5], %s122_s19, %s122_s19, %s123_s20  }
  0x12   :  { %117 = dma.done.wait [#allocation5], 256  }
  0x13   :  { %118 = vsyncadd [#allocation5], 4294967040  ;;  %v25_v0 = vld [vmem:[#allocation4] sm:$0xff]  ;;  %vm29_vm0 = vcmask 261120   ;;  %v26_v1 = vld [vmem:[#allocation4 + $0x8] sm:$0xff]  ;;  %v41_v10 = vstv %s177_s0  ;;  %s124_s24 = smov [#allocation7]  }
  0x14   :  { %v27_v2 = vmul.f32 %v25_v0, %v25_v0  ;;  %v28_v3 = vmul.f32 %v26_v1, %v26_v1  ;;  %s53_s25 = sshll.u32 %s124_s24, 4  ;;  %s54_s25 = int_to_ptr.vmem [resolvable:$true] %s53_s25 }
  0x15   :  { %s95_s26 = scalar_lea.vmem %s54_s25, 256  ;;  %p100_p9 = scmp.lt.s32.totalorder %s54_s25, %s54_s25 }
  0x16   :  { %v30_v4 = vsel %vm29_vm0, %v27_v2, 0.0  ;;  %v33_v5 = vsel %vm29_vm0, %v28_v3, 0.0  ;;  %p96_p8 = scmp.ne.s32.totalorder %s54_s25, %s95_s26  ;;  %p101_p10 = scmp.lt.s32.totalorder %s95_s26, %s95_s26 }
  0x17   :  { %31 = vadd.xlane.f32.xlu0 %v30_v4 }
  0x18   :  { %p102_p11 = por %p101_p10, %p100_p9 }
  0x1a   :  { %p103_p12 = pnand %p102_p11, %p96_p8 }
  0x1b   :  { %34 = vadd.xlane.f32.xlu0 %v33_v5 }
  0xa4   :  { %v32_v6 = vpop.xlane.xlu0 %31 }
  0xa5   :  { %v37_v7 = vmax.f32 %v32_v6, 1e-10 }
  0xa7   :  { %69 = vrsqrt.f32 %v37_v7 }
  0xa8   :  { %v35_v8 = vpop.xlane.xlu0 %34 }
  0xa9   :  { %v38_v9 = vmax.f32 %v35_v8, 1e-10 }
  0xab   :  { %71 = vrsqrt.f32 %v38_v9 }
  0xb1   :  { %v70_v11 = vpop.eup %69 }
  0xb2   :  { %v42_v12 = vmul.f32 %v70_v11, %v41_v10 }
  0xb4   :  { %v44_v13 = vmul.f32 %v42_v12, %v25_v0 }
  0xb5   :  { %v72_v14 = vpop.eup %71 }
  0xb6   :  { %v43_v15 = vmul.f32 %v72_v14, %v41_v10  ;;  %46 = vst.msk [vmem:[#allocation7] sm:$0xff] %vm29_vm0, %v44_v13 }
  0xb8   :  { %v45_v16 = vmul.f32 %v43_v15, %v26_v1 }
  0xba   :  { %47 = vst.msk [vmem:[#allocation7 + $0x8] sm:$0xff] %vm29_vm0, %v45_v16 }
  0xbb   :  { %106 = shalt.err (!%p103_p12)
}
  0xbc   :  { %s107_s28 = scalar_lea.hbm %s179_s2, 256 }
  0xbd   :  { %p108_p13 = scmp.ne.s32.totalorder %s179_s2, %s107_s28  ;;  %p111_p0 = scmp.lt.u32.totalorder %s107_s28, %s179_s2 }
  0xbf   :  { %p113_p1 = pnand %p111_p0, %p108_p13 }
  0xc1   :  { %116 = shalt.err (!%p113_p1)
}
  0xc2   :  { %59 = dma.vmem_to_hbm [thread:$0]  %s54_s25, 256, %s179_s2, [#allocation6], %s122_s19, %s122_s19, %s123_s20  }
  0xc3   :  { %119 = dma.done.wait [#allocation6], 256  }
  0xc4   :  { %120 = vsyncadd [#allocation6], 4294967040 }
  0xc5   :  { %63 = vsyncpa [#allocation5], 1 }
  0xc6   :  { %64 = vsyncpa [#allocation6], 1 }

</bundles_post_ra>
